<compile_context>
chip_gen: v7x
topology: tpu7x:2x2x1
jax: 0.10.0
libtpu: 0.0.40
codegen_flags: <defaults>
</compile_context>

<pallas_src>
import numpy as np
import jax
import jax.numpy as jnp
from jax.experimental import pallas as pl
from jax.experimental.pallas import tpu as pltpu

# ---- small, module-consistent hyperparameters -------------------------------
HIDDEN = 32          # bert.config.hidden_size
DIM_CLS = 16         # mtl_params.dim_cls_linear
NUM_LABELS = 2       # mtl_params.num_labels
PAD_TOKEN_ID = 0
CLS_TOKEN_ID = 101
SEP_TOKEN_ID = 102
MAX_LENGTH = 64

# ---- TPU-friendly sizes ------------------------------------------------------
D_PAD = 32                         # DIM_CLS padded to a bf16-sublane multiple
L_PAD = 128                        # lane-dense output / label dim
NEG_INF = -1e30                    # padded logit lanes -> exp() == 0 in softmax
SMALL_BATCH = 128                  # <= this: single full-array block, no padding


def cls_head_kernel(x_ref, w1_ref, b1_ref, w2_ref, b2_ref, o_ref):
    # x  : [Bt, HIDDEN]     bf16  (Bt = batch or B_TILE)
    # w1 : [HIDDEN, D_PAD]  bf16
    # b1 : [1, D_PAD]       f32, zeros on padded dim_cls columns
    # w2 : [D_PAD, L_PAD]   bf16, zero rows for padded dim_cls, zero cols padding
    # b2 : [1, L_PAD]       f32, real bias on first NUM_LABELS lanes, -1e30 on
    #                       padded lanes (softmax mask).  MUST stay f32: in bf16
    #                       -1e30 -> -inf and the (logits - m) path can NaN.
    # o  : [Bt, L_PAD]      f32
    # Linear 1 (bf16 MXU operands, f32 accumulation) + f32 bias + Tanh.
    h = jnp.tanh(
        jnp.dot(x_ref[...], w1_ref[...], preferred_element_type=jnp.float32)
        + b1_ref[...]
    )
    # Linear 2 (h cast back to bf16 for a single MXU pass) + f32 bias/mask.
    logits = (
        jnp.dot(h.astype(jnp.bfloat16), w2_ref[...],
                preferred_element_type=jnp.float32)
        + b2_ref[...]
    )
    # Softmax(dim=-1), numerically stable, f32; divide via EUP reciprocal.
    m = jnp.max(logits, axis=-1, keepdims=True)
    e = jnp.exp(logits - m)
    s = jnp.sum(e, axis=-1, keepdims=True)
    o_ref[...] = (e * pl.reciprocal(s, approx=True)).astype(o_ref.dtype)


def prepare_cls_head_params(w1, b1, w2, b2):
    """One-time (parameter-load-time) padding of the head weights.

    Hoisted out of the per-call path so no scatter/pad HLOs run per forward().
    """
    w1 = np.asarray(w1, np.float32)
    b1 = np.asarray(b1, np.float32)
    w2 = np.asarray(w2, np.float32)
    b2 = np.asarray(b2, np.float32)
    hidden, dim_cls = w1.shape
    num_labels = w2.shape[1]

    w1_pad = np.zeros((hidden, D_PAD), np.float32)
    w1_pad[:, :dim_cls] = w1
    b1_pad = np.zeros((1, D_PAD), np.float32)          # zeros -> tanh(0)=0 on pads
    b1_pad[0, :dim_cls] = b1
    w2_pad = np.zeros((D_PAD, L_PAD), np.float32)      # zero rows kill padded h cols
    w2_pad[:dim_cls, :num_labels] = w2
    b2_pad = np.full((1, L_PAD), NEG_INF, np.float32)  # -1e30 masks padded lanes
    b2_pad[0, :num_labels] = b2

    return (jnp.asarray(w1_pad, jnp.bfloat16),
            jnp.asarray(b1_pad, jnp.float32),
            jnp.asarray(w2_pad, jnp.bfloat16),
            jnp.asarray(b2_pad, jnp.float32))


def _choose_b_tile(batch):
    if batch <= SMALL_BATCH:
        return None          # single full-array block, grid=(1,), no padding
    if batch <= 256:
        return 128           # >= 2 grid steps -> both v7x TensorCores usable
    return 256               # matches v6e/v7x 256-wide MXU M dim


def cls_head_pallas(pooled, w1_pad, b1_pad, w2_pad, b2_pad):
    """cls_head forward: softmax(tanh(pooled @ w1 + b1) @ w2 + b2)."""
    batch, hidden = pooled.shape
    x = pooled.astype(jnp.bfloat16)

    b_tile = _choose_b_tile(batch)
    if b_tile is None:
        bp, grid_b, b_blk = batch, 1, batch            # no batch padding at all
        x_in = x
    else:
        bp = pl.cdiv(batch, b_tile) * b_tile
        grid_b, b_blk = bp // b_tile, b_tile
        x_in = jnp.pad(x, ((0, bp - batch), (0, 0))) if bp != batch else x

    cost = pl.CostEstimate(
        flops=2 * bp * (hidden * D_PAD + D_PAD * L_PAD),
        transcendentals=bp * (D_PAD + L_PAD),          # tanh + exp
        bytes_accessed=(2 * bp * hidden + 2 * hidden * D_PAD + 4 * D_PAD
                        + 2 * D_PAD * L_PAD + 4 * L_PAD + 4 * bp * L_PAD),
    )

    out_pad = pl.pallas_call(
        cls_head_kernel,
        out_shape=jax.ShapeDtypeStruct((bp, L_PAD), jnp.float32),
        grid_spec=pltpu.PrefetchScalarGridSpec(
            num_scalar_prefetch=0,
            grid=(grid_b,),
            in_specs=[
                pl.BlockSpec((b_blk, hidden), lambda i: (i, 0)),
                pl.BlockSpec((hidden, D_PAD), lambda i: (0, 0)),
                pl.BlockSpec((1, D_PAD), lambda i: (0, 0)),
                pl.BlockSpec((D_PAD, L_PAD), lambda i: (0, 0)),
                pl.BlockSpec((1, L_PAD), lambda i: (0, 0)),
            ],
            out_specs=pl.BlockSpec((b_blk, L_PAD), lambda i: (i, 0)),
        ),
        compiler_params=pltpu.CompilerParams(
            # batch axis is independent -> shardable across the 2 TCs on v7x
            dimension_semantics=("parallel",)
        ),
        cost_estimate=cost,
    )(x_in, w1_pad, b1_pad, w2_pad, b2_pad)

    return out_pad[:batch, :NUM_LABELS]


def xavier_normal(key, fan_in, fan_out):
    std = np.sqrt(2.0 / (fan_in + fan_out))
    return jax.random.normal(key, (fan_in, fan_out), jnp.float32) * std


def linear_bias(key, fan_in, size):
    bound = 1.0 / np.sqrt(fan_in)
    return jax.random.uniform(key, (size,), jnp.float32, -bound, bound)


def build_bert_inputs(queries, docs):
    """Glue mirroring forward(): [CLS] q [SEP] d, truncation, padding, position ids."""
    input_tensors, position_ids = [], []
    for q, d in zip(queries, docs):
        if len(q) + len(d) + 2 > MAX_LENGTH:
            d = d[: MAX_LENGTH - len(q) - 2]
        seq = np.concatenate([[CLS_TOKEN_ID], q, [SEP_TOKEN_ID], d]).astype(np.int32)
        pos = np.array(list(range(0, len(q) + 1)) + list(range(0, len(d) + 1)),
                       dtype=np.int32)
        input_tensors.append(seq)
        position_ids.append(pos)
    max_len = max(len(s) for s in input_tensors)
    ids = np.full((len(input_tensors), max_len), PAD_TOKEN_ID, dtype=np.int32)
    pos = np.zeros((len(input_tensors), max_len), dtype=np.int32)
    mask = np.zeros((len(input_tensors), max_len), dtype=np.float32)
    for i, (s, p) in enumerate(zip(input_tensors, position_ids)):
        ids[i, : len(s)] = s
        pos[i, : len(p)] = p
        mask[i, : len(s)] = 1.0
    return jnp.asarray(ids), jnp.asarray(pos), jnp.asarray(mask)


def _reference_same_precision(pooled, w1, b1, w2, b2):
    """Reference with the kernel's precision (bf16 MXU operands, f32 bias/acc)."""
    xb = pooled.astype(jnp.bfloat16)
    h = jnp.tanh(jnp.dot(xb, w1.astype(jnp.bfloat16),
                         preferred_element_type=jnp.float32) + b1)
    logits = jnp.dot(h.astype(jnp.bfloat16), w2.astype(jnp.bfloat16),
                     preferred_element_type=jnp.float32) + b2
    return jax.nn.softmax(logits, axis=-1)


if __name__ == "__main__":
    key = jax.random.PRNGKey(0)
    k_q, k_d, k_pool, k_w1, k_b1, k_w2, k_b2, k_pool2 = jax.random.split(key, 8)

    # ---- forward() input assembly (glue) ------------------------------------
    batch = 2
    query_lens = [3, 5]
    doc_lens = [7, 4]
    queries = [np.asarray(jax.random.randint(jax.random.fold_in(k_q, i), (l,), 999, 2000))
               for i, l in enumerate(query_lens)]
    docs = [np.asarray(jax.random.randint(jax.random.fold_in(k_d, i), (l,), 2000, 3000))
            for i, l in enumerate(doc_lens)]
    bert_ids, bert_pos, bert_mask = build_bert_inputs(queries, docs)

    # TODO(synk): BertModel encoder not translated; synthetic pooled [CLS] output.
    pooled = jax.random.normal(k_pool, (batch, HIDDEN), jnp.float32)

    # ---- cls_head parameters (xavier_normal_ weights, default-uniform biases) --
    w1 = xavier_normal(k_w1, HIDDEN, DIM_CLS)          # stored as [in, out]
    b1 = linear_bias(k_b1, HIDDEN, DIM_CLS)
    w2 = xavier_normal(k_w2, DIM_CLS, NUM_LABELS)
    b2 = linear_bias(k_b2, DIM_CLS, NUM_LABELS)

    # One-time, parameter-load-time padding (hoisted out of the per-call path).
    padded_params = prepare_cls_head_params(w1, b1, w2, b2)

    head = jax.jit(cls_head_pallas)

    # ---- run Pallas kernel (small-batch / no-padding path) -------------------
    classes = jax.block_until_ready(head(pooled, *padded_params))

    # ---- references ----------------------------------------------------------
    ref_bf16 = _reference_same_precision(pooled, w1, b1, w2, b2)
    ref_f32 = jax.nn.softmax(jnp.tanh(pooled @ w1 + b1) @ w2 + b2, axis=-1)

    # module's `assert torch.all(classes == classes)` (NaN check)
    assert bool(jnp.all(classes == classes)), "NaN in classifier output"
    np.testing.assert_allclose(np.asarray(classes), np.asarray(ref_bf16),
                               rtol=2e-3, atol=2e-3)
    np.testing.assert_allclose(np.asarray(classes), np.asarray(ref_f32),
                               rtol=0, atol=5e-2)
    np.testing.assert_allclose(np.asarray(jnp.sum(classes, axis=-1)),
                               np.ones(batch), rtol=2e-3, atol=2e-3)

    # ---- also exercise the tiled large-batch path (grid >= 2) ----------------
    batch_lg = 160                      # -> B_TILE=128, padded to 256, grid=(2,)
    pooled_lg = jax.random.normal(k_pool2, (batch_lg, HIDDEN), jnp.float32)
    classes_lg = jax.block_until_ready(head(pooled_lg, *padded_params))
    assert bool(jnp.all(classes_lg == classes_lg)), "NaN in classifier output (tiled)"
    ref_lg = _reference_same_precision(pooled_lg, w1, b1, w2, b2)
    np.testing.assert_allclose(np.asarray(classes_lg), np.asarray(ref_lg),
                               rtol=2e-3, atol=2e-3)
    np.testing.assert_allclose(np.asarray(jnp.sum(classes_lg, axis=-1)),
                               np.ones(batch_lg), rtol=2e-3, atol=2e-3)

    print("KERNEL_OK")
</pallas_src>

<mosaic_0001>
module attributes {stable_mosaic.version = 11 : i64} {
  func.func @cls_head_kernel(%arg0: i32, %arg1: memref<2x32xbf16, #tpu.memory_space<vmem>>, %arg2: memref<32x32xbf16, #tpu.memory_space<vmem>>, %arg3: memref<1x32xf32, #tpu.memory_space<vmem>>, %arg4: memref<32x128xbf16, #tpu.memory_space<vmem>>, %arg5: memref<1x128xf32, #tpu.memory_space<vmem>>, %arg6: memref<2x128xf32, #tpu.memory_space<vmem>>) attributes {dimension_semantics = [#tpu.dimension_semantics<parallel>], iteration_bounds = array<i64: 1>, scalar_prefetch = 0 : i64, scratch_operands = 0 : i64, tpu.core_type = #tpu.core_type<tc>, window_params = [{transform_indices = @transform_0, window_bounds = array<i64: 2, 32>}, {pipeline_mode = #tpu.pipeline_mode<synchronous>, transform_indices = @transform_1, window_bounds = array<i64: 32, 32>}, {pipeline_mode = #tpu.pipeline_mode<synchronous>, transform_indices = @transform_2, window_bounds = array<i64: 1, 32>}, {pipeline_mode = #tpu.pipeline_mode<synchronous>, transform_indices = @transform_3, window_bounds = array<i64: 32, 128>}, {pipeline_mode = #tpu.pipeline_mode<synchronous>, transform_indices = @transform_4, window_bounds = array<i64: 1, 128>}, {transform_indices = @transform_5, window_bounds = array<i64: 2, 128>}]} {
    %c0 = arith.constant 0 : index
    %c0_0 = arith.constant 0 : index
    %0 = vector.load %arg1[%c0, %c0_0] : memref<2x32xbf16, #tpu.memory_space<vmem>>, vector<2x32xbf16>
    %c0_1 = arith.constant 0 : index
    %c0_2 = arith.constant 0 : index
    %1 = vector.load %arg2[%c0_1, %c0_2] : memref<32x32xbf16, #tpu.memory_space<vmem>>, vector<32x32xbf16>
    %cst = arith.constant dense<0.000000e+00> : vector<2x32xf32>
    %2 = tpu.matmul %0, %1, %cst {dimension_numbers = #tpu.dot_dimension_numbers<[1], [0], [0], [1], [0, 0, 1, 1], [], []>} : vector<2x32xbf16>, vector<32x32xbf16>, vector<2x32xf32> -> vector<2x32xf32>
    %c0_3 = arith.constant 0 : index
    %c0_4 = arith.constant 0 : index
    %3 = vector.load %arg3[%c0_3, %c0_4] : memref<1x32xf32, #tpu.memory_space<vmem>>, vector<1x32xf32>
    %4 = vector.broadcast %3 : vector<1x32xf32> to vector<2x32xf32>
    %5 = arith.addf %2, %4 : vector<2x32xf32>
    %6 = math.tanh %5 : vector<2x32xf32>
    %7 = arith.truncf %6 : vector<2x32xf32> to vector<2x32xbf16>
    %c0_5 = arith.constant 0 : index
    %c0_6 = arith.constant 0 : index
    %8 = vector.load %arg4[%c0_5, %c0_6] : memref<32x128xbf16, #tpu.memory_space<vmem>>, vector<32x128xbf16>
    %cst_7 = arith.constant dense<0.000000e+00> : vector<2x128xf32>
    %9 = tpu.matmul %7, %8, %cst_7 {dimension_numbers = #tpu.dot_dimension_numbers<[1], [0], [0], [1], [0, 0, 1, 1], [], []>} : vector<2x32xbf16>, vector<32x128xbf16>, vector<2x128xf32> -> vector<2x128xf32>
    %c0_8 = arith.constant 0 : index
    %c0_9 = arith.constant 0 : index
    %10 = vector.load %arg5[%c0_8, %c0_9] : memref<1x128xf32, #tpu.memory_space<vmem>>, vector<1x128xf32>
    %11 = vector.broadcast %10 : vector<1x128xf32> to vector<2x128xf32>
    %12 = arith.addf %9, %11 : vector<2x128xf32>
    %cst_10 = arith.constant dense<0xFF800000> : vector<2xf32>
    %13 = vector.multi_reduction <maximumf>, %12, %cst_10 [1] : vector<2x128xf32> to vector<2xf32>
    %14 = vector.shape_cast %13 : vector<2xf32> to vector<2x1xf32>
    %15 = vector.broadcast %14 : vector<2x1xf32> to vector<2x128xf32>
    %16 = arith.subf %12, %15 : vector<2x128xf32>
    %17 = math.exp %16 : vector<2x128xf32>
    %cst_11 = arith.constant dense<0.000000e+00> : vector<2xf32>
    %18 = vector.multi_reduction <add>, %17, %cst_11 [1] : vector<2x128xf32> to vector<2xf32>
    %19 = vector.shape_cast %18 : vector<2xf32> to vector<2x1xf32>
    %20 = tpu.reciprocal %19 {approx = true} : vector<2x1xf32> -> vector<2x1xf32>
    %21 = vector.broadcast %20 : vector<2x1xf32> to vector<2x128xf32>
    %22 = arith.mulf %17, %21 : vector<2x128xf32>
    %c0_12 = arith.constant 0 : index
    %c0_13 = arith.constant 0 : index
    %23 = vector.load %arg6[%c0_12, %c0_13] : memref<2x128xf32, #tpu.memory_space<vmem>>, vector<2x128xf32>
    tpu.vector_store %arg6[%c0_12, %c0_13], %22 {strides = array<i32>} : memref<2x128xf32, #tpu.memory_space<vmem>>, vector<2x128xf32>,
    return
  }
  func.func @transform_0(%arg0: i32) -> (i32, i32) {
    %c0_i32 = arith.constant 0 : i32
    %c0_i32_0 = arith.constant 0 : i32
    return %arg0, %c0_i32 : i32, i32
  }
  func.func @transform_1(%arg0: i32) -> (i32, i32) {
    %c0_i32 = arith.constant 0 : i32
    %c0_i32_0 = arith.constant 0 : i32
    %c0_i32_1 = arith.constant 0 : i32
    return %c0_i32, %c0_i32_0 : i32, i32
  }
  func.func @transform_2(%arg0: i32) -> (i32, i32) {
    %c0_i32 = arith.constant 0 : i32
    %c0_i32_0 = arith.constant 0 : i32
    %c0_i32_1 = arith.constant 0 : i32
    return %c0_i32, %c0_i32_0 : i32, i32
  }
  func.func @transform_3(%arg0: i32) -> (i32, i32) {
    %c0_i32 = arith.constant 0 : i32
    %c0_i32_0 = arith.constant 0 : i32
    %c0_i32_1 = arith.constant 0 : i32
    return %c0_i32, %c0_i32_0 : i32, i32
  }
  func.func @transform_4(%arg0: i32) -> (i32, i32) {
    %c0_i32 = arith.constant 0 : i32
    %c0_i32_0 = arith.constant 0 : i32
    %c0_i32_1 = arith.constant 0 : i32
    return %c0_i32, %c0_i32_0 : i32, i32
  }
  func.func @transform_5(%arg0: i32) -> (i32, i32) {
    %c0_i32 = arith.constant 0 : i32
    %c0_i32_0 = arith.constant 0 : i32
    return %arg0, %c0_i32 : i32, i32
  }
}

</mosaic_0001>

<bundles_post_ra>
// kernel: cls_head_pallas.1
= control target key start
LH: loop header
LB: loop body
LE: loop exit
PB: predicated region body
PF: predicated region fallthrough
CT: control target
= control target key end

     0   :  { %10 = vsyncpa [#allocation3], 0  ;;  %s418_s0 = inlined_call_operand.vmem [shape: bf16[2,32], index: 0, kind: input, shape index: {}]   ;;  %s419_s1 = inlined_call_operand.hbm [shape: bf16[32,32], index: 1, kind: input, shape index: {}]   ;;  %s420_s2 = inlined_call_operand.vmem [shape: f32[1,32], index: 2, kind: input, shape index: {}]   ;;  %s421_s3 = inlined_call_operand.hbm [shape: bf16[32,128], index: 3, kind: input, shape index: {}]   ;;  %s422_s4 = inlined_call_operand.vmem [shape: f32[1,128], index: 4, kind: input, shape index: {}]   ;;  %s423_s5 = inlined_call_operand.hbm [shape: f32[2,128], index: 5, kind: output, shape index: {}]  }
   0x1   :  { %11 = vsyncpa [#allocation6], 0 }
   0x2   :  { %12 = vsyncpa [#allocation4], 0  ;;  %s334_s18 = smov [#allocation2]   ;;  %s262_s22 = scalar_lea.hbm %s419_s1, 256 }
   0x3   :  { %s20_s19 = sshll.u32 %s334_s18, 4  ;;  %p263_p0 = scmp.ne.s32.totalorder %s419_s1, %s262_s22  ;;  %s21_s19 = int_to_ptr.vmem [resolvable:$true] %s20_s19 }
   0x4   :  { %p266_p1 = scmp.lt.u32.totalorder %s262_s22, %s419_s1 }
   0x6   :  { %p268_p2 = pnand %p266_p1, %p263_p0 }
   0x8   :  { %271 = shalt.err (!%p268_p2)
}
   0x9   :  { %s272_s27 = scalar_lea.vmem %s21_s19, 256  ;;  %p277_p4 = scmp.lt.s32.totalorder %s21_s19, %s21_s19 }
   0xa   :  { %p273_p3 = scmp.ne.s32.totalorder %s21_s19, %s272_s27  ;;  %p278_p5 = scmp.lt.s32.totalorder %s272_s27, %s272_s27 }
   0xc   :  { %p279_p6 = por %p278_p5, %p277_p4 }
   0xe   :  { %p280_p7 = pnand %p279_p6, %p273_p3 }
  0x10   :  { %283 = shalt.err (!%p280_p7)
}
  0x11   :  { %s335_s28 = smov 64   ;;  %s336_s29 = smov 4  }
  0x12   :  { %26 = dma.hbm_to_vmem [thread:$0]  %s419_s1, 256, %s21_s19, [#allocation3], %s335_s28, %s335_s28, %s336_s29  }
  0x13   :  { %s337_s7 = smov [#allocation5]   ;;  %s284_s11 = scalar_lea.hbm %s421_s3, 256 }
  0x14   :  { %s34_s8 = sshll.u32 %s337_s7, 4  ;;  %p285_p8 = scmp.ne.s32.totalorder %s421_s3, %s284_s11  ;;  %s35_s8 = int_to_ptr.vmem [resolvable:$true] %s34_s8 }
  0x15   :  { %p288_p9 = scmp.lt.u32.totalorder %s284_s11, %s421_s3 }
  0x17   :  { %p290_p10 = pnand %p288_p9, %p285_p8 }
  0x19   :  { %293 = shalt.err (!%p290_p10)
}
  0x1a   :  { %s294_s16 = scalar_lea.vmem %s35_s8, 256  ;;  %p299_p12 = scmp.lt.s32.totalorder %s35_s8, %s35_s8 }
  0x1b   :  { %p295_p11 = scmp.ne.s32.totalorder %s35_s8, %s294_s16  ;;  %p300_p13 = scmp.lt.s32.totalorder %s294_s16, %s294_s16 }
  0x1d   :  { %p301_p0 = por %p300_p13, %p299_p12 }
  0x1f   :  { %p302_p1 = pnand %p301_p0, %p295_p11 }
  0x21   :  { %305 = shalt.err (!%p302_p1)
}
  0x22   :  { %40 = dma.hbm_to_vmem [thread:$0]  %s421_s3, 256, %s35_s8, [#allocation6], %s335_s28, %s335_s28, %s336_s29  }
  0x23   :  { %328 = dma.done.wait [#allocation3], 256  }
  0x24   :  { %329 = vsyncadd [#allocation3], 4294967040 }
  0x25   :  { %330 = dma.done.wait [#allocation6], 256  }
  0x26   :  { %331 = vsyncadd [#allocation6], 4294967040  ;;  %v338_v0 = vmov 0.0   ;;  %vm339_vm0 = vmmov 0   ;;  %v252_v1 = vld [vmem:[#allocation2] sm:$0xff]   ;;  %v253_v2 = vld [vmem:[#allocation2 + $0x8] sm:$0xff]  }
  0x27   :  { %229 = vmatprep.subr.bf16.mxu0 %v338_v0  ;;  %233 = vmatprep.mubr.msk.bf16.mxu0 %vm339_vm0, %v338_v0  ;;  %v50_v3 = vld [vmem:[%s418_s0] sm:$0x1]  ;;  %vm74_vm1 = vcmask 261120   ;;  %v254_v4 = vld [vmem:[#allocation5] sm:$0xff]   ;;  %v255_v5 = vld [vmem:[#allocation5 + $0x8] sm:$0xff]   ;;  %vm186_vm2 = vcmask 1041408  }
  0x28   :  { %237 = vmatprep.subr.bf16.mxu1 %v338_v0  ;;  %241 = vmatprep.mubr.msk.bf16.mxu1 %vm339_vm0, %v338_v0  ;;  %v215_v6 = vld [vmem:[%s420_s2] ss:$0 sm:$0xff]  ;;  %s340_s2 = smov [#allocation7]  }
  0x29   :  { %230 = vmatpush3.bf16.msra.mxu0 %v252_v1  ;;  %238 = vmatpush3.bf16.msra.mxu1 %v254_v4  ;;  %v219_v14 = vld [vmem:[%s422_s4] ss:$0 sm:$0xff]  ;;  %s205_s22 = sshll.u32 %s340_s2, 4  ;;  %s206_s22 = int_to_ptr.vmem [resolvable:$true] %s205_s22 }
  0x2a   :  { %231 = vmatprep.subr.bf16.mxu0 %v338_v0  ;;  %239 = vmatprep.subr.bf16.mxu1 %v338_v0  ;;  %s306_s4 = scalar_lea.vmem %s206_s22, 32  ;;  %p311_p3 = scmp.lt.s32.totalorder %s206_s22, %s206_s22 }
  0x2b   :  { %p307_p2 = scmp.ne.s32.totalorder %s206_s22, %s306_s4  ;;  %p312_p4 = scmp.lt.s32.totalorder %s306_s4, %s306_s4 }
  0x2d   :  { %232 = vmatpush3.bf16.msra.mxu0 %v253_v2  ;;  %240 = vmatpush3.bf16.msra.mxu1 %v255_v5  ;;  %p313_p5 = por %p312_p4, %p311_p3 }
  0x2f   :  { %p314_p6 = pnand %p313_p5, %p307_p2 }
  0x30   :  { %234 = vmatmul.mubr.msk.bf16.vlgmr.msra.gmra.mrb[0].mxu0 %vm74_vm1, %v50_v3 }
 0x103   :  { %v112_v7 = vpop.f32.mrb[0].mxu0 }
 0x104   :  { %v113_v8 = vadd.f32 %v215_v6, %v112_v7  ;;  %v235_v9 = vpop.f32.mrb[1].mxu0 }
 0x105   :  { %v115_v10 = vpop.f32.mrb[2].mxu0 }
 0x106   :  { %256 = vtanh.f32 %v113_v8  ;;  %v236_v11 = vpop.f32.mrb[3].mxu0 }
 0x110   :  { %v257_v12 = vpop.eup %256 }
 0x111   :  { %v119_v13 = vpack.c.bf16 %v257_v12, %v257_v12 }
 0x113   :  { %242 = vmatmul.mubr.msk.bf16.vlgmr.msra.gmra.mrb[0].mxu1 %vm74_vm1, %v119_v13 }
 0x1e6   :  { %v180_v15 = vpop.f32.mrb[0].mxu1 }
 0x1e7   :  { %v181_v16 = vadd.f32 %v219_v14, %v180_v15  ;;  %v243_v17 = vpop.f32.mrb[1].mxu1 }
 0x1e8   :  { %v183_v18 = vpop.f32.mrb[2].mxu1 }
 0x1e9   :  { %v244_v19 = vpop.f32.mrb[3].mxu1  ;;  %v187_v20 = vsel %vm186_vm2, %v181_v16, -inf }
 0x1ea   :  { %188 = vmax.xlane.f32.xlu0 %v187_v20 }
 0x277   :  { %v189_v21 = vpop.xlane.xlu0 %188 }
 0x278   :  { %v190_v22 = vsub.f32 %v181_v16, %v189_v21 }
 0x27a   :  { %v191_v23 = vmul.f32 1.442695, %v190_v22 }
 0x27c   :  { %258 = vpow2.f32 %v191_v23 }
 0x286   :  { %v259_v24 = vpop.eup %258 }
 0x287   :  { %v193_v25 = vsel %vm186_vm2, %v259_v24, 0.0 }
 0x288   :  { %194 = vadd.xlane.f32.xlu0 %v193_v25 }
 0x315   :  { %v195_v26 = vpop.xlane.xlu0 %194 }
 0x316   :  { %260 = vrcp.f32 %v195_v26 }
 0x320   :  { %v261_v27 = vpop.eup %260 }
 0x321   :  { %v197_v28 = vmul.f32 %v261_v27, %v259_v24 }
 0x323   :  { %198 = vst [vmem:[#allocation7] sm:$0x3] %v197_v28 }
 0x324   :  { %317 = shalt.err (!%p314_p6)
}
 0x325   :  { %s318_s25 = scalar_lea.hbm %s423_s5, 32 }
 0x326   :  { %p319_p7 = scmp.ne.s32.totalorder %s423_s5, %s318_s25  ;;  %p322_p8 = scmp.lt.u32.totalorder %s318_s25, %s423_s5 }
 0x328   :  { %p324_p9 = pnand %p322_p8, %p319_p7 }
 0x32a   :  { %327 = shalt.err (!%p324_p9)
}
 0x32b   :  { %208 = dma.vmem_to_hbm [thread:$0]  %s206_s22, 32, %s423_s5, [#allocation4]  }
 0x32c   :  { %332 = dma.done.wait [#allocation4], 32  }
 0x32d   :  { %333 = vsyncadd [#allocation4], 4294967264 }
 0x32e   :  { %212 = vsyncpa [#allocation3], 1 }
 0x32f   :  { %213 = vsyncpa [#allocation6], 1 }
 0x330   :  { %214 = vsyncpa [#allocation4], 1 }

</bundles_post_ra>
